<compile_context>
chip_gen: v5e
topology: v5e:2x2
jax: 0.10.0
libtpu: 0.0.40
codegen_flags: <defaults>
</compile_context>

<pallas_src>
import functools

import jax
import jax.numpy as jnp
from jax.experimental import pallas as pl
from jax.experimental.pallas import tpu as pltpu

_LANE = 128
_SUBLANE = 8
_SUB_ROWS = 1024  # rows per in-kernel compute chunk (bounds f32 temps ~0.5 MiB)


def _round_up(x, m):
    return ((x + m - 1) // m) * m


def _round_down(x, m):
    return (x // m) * m


def _bce_sum_f32(x, y):
    """Plain-JAX stable BCE-with-logits sum (tiny tails / tiny-input fallback)."""
    x = x.astype(jnp.float32)
    y = y.astype(jnp.float32)
    return jnp.sum(jnp.maximum(x, 0.0) - x * y + jnp.log1p(jnp.exp(-jnp.abs(x))))


@functools.lru_cache(maxsize=1)
def _tpu_hw():
    """Best-effort (num_tensorcores, physical_vmem_bytes, default_tile_rows)."""
    kind = ""
    try:
        kind = jax.devices()[0].device_kind.lower()
    except Exception:
        pass
    is_v7 = "v7" in kind
    num_cores = 2 if is_v7 else 1          # v5e / v6e have a single TensorCore
    vmem_phys = (64 if is_v7 else 128) * (1 << 20)
    try:
        v = getattr(pltpu.get_tpu_info(), "vmem_capacity_bytes", None)
        if v:
            vmem_phys = int(v)
    except Exception:
        pass
    is_v5e = ("v5 lite" in kind) or ("v5e" in kind)
    default_tile = 4096 if is_v5e else 8192
    return num_cores, vmem_phys, default_tile


def _bce_sum_kernel(pred_ref, gt_ref, out_ref, *, valid_rows, needs_mask, sub_rows):
    """Accumulate the BCE-with-logits sum of one (tm, 128) block into the
    per-core (1, 8, 128) resident output block."""
    pi = pl.program_id(0)
    i = pl.program_id(1)
    steps = pl.num_programs(1)

    @pl.when(i == 0)
    def _():
        out_ref[...] = jnp.zeros_like(out_ref)

    tm, lane = pred_ref.shape
    block_row0 = (pi * steps + i) * tm  # global (unclamped) first row of block

    def accumulate(loss):
        # Lane/sublane-parallel partial sums: pure VPU vreg adds.  The single
        # cross-lane reduce over (8,128) happens once, outside the kernel.
        out_ref[0] += loss.reshape(sub_rows // _SUBLANE, _SUBLANE, lane).sum(axis=0)

    def chunk(c, carry):
        r0 = c * sub_rows
        x = pred_ref[pl.ds(r0, sub_rows), :].astype(jnp.float32)
        y = gt_ref[pl.ds(r0, sub_rows), :].astype(jnp.float32)
        # Numerically-stable BCE-with-logits (PyTorch's formula):
        #   loss(x, y) = max(x, 0) - x*y + log1p(exp(-|x|))
        loss = jnp.maximum(x, 0.0) - x * y + jnp.log1p(jnp.exp(-jnp.abs(x)))

        if needs_mask:
            chunk_row0 = block_row0 + r0
            fully_valid = chunk_row0 + sub_rows <= valid_rows

            @pl.when(fully_valid)
            def _():
                accumulate(loss)

            @pl.when(jnp.logical_not(fully_valid))
            def _():
                # Boundary / out-of-range rows: keep the SELECT (not a multiply):
                # Pallas pads boundary blocks with unspecified data that may be
                # NaN/Inf, which a multiply-by-zero would propagate.
                row = jax.lax.broadcasted_iota(jnp.int32, (sub_rows, lane), 0)
                accumulate(jnp.where(chunk_row0 + row < valid_rows, loss, 0.0))
        else:
            accumulate(loss)
        return carry

    n_chunks = tm // sub_rows
    if n_chunks == 1:
        chunk(0, 0)
    else:
        jax.lax.fori_loop(0, n_chunks, chunk, 0, unroll=True)


def bce_with_logits_mean(pred, gt, *, tile_m=None):
    """Mean BCE-with-logits over all elements, computed in a Pallas kernel."""
    assert pred.shape == gt.shape
    n = pred.size
    assert n > 0

    pred_flat = pred.reshape(-1)
    gt_flat = gt.reshape(-1)

    num_cores, vmem_phys, default_tile = _tpu_hw()
    if tile_m is None:
        tile_m = default_tile

    lane_tail = n % _LANE
    bulk_n = n - lane_tail
    m_rows = bulk_n // _LANE

    # Tiny inputs (< 8 full lanes): not worth a kernel launch.
    if m_rows < _SUBLANE:
        return _bce_sum_f32(pred_flat, gt_flat) / jnp.float32(n)

    # Sub-128 ragged tail handled in plain JAX (tiny slice).
    tail_sum = jnp.float32(0.0)
    if lane_tail:
        tail_sum = _bce_sum_f32(pred_flat[bulk_n:], gt_flat[bulk_n:])
        # TODO(synk): this bulk slice copies once in HBM for non-128-aligned n;
        # a manual-DMA (pl.ANY) path could stream the unaligned flat array
        # without the copy.
        pred_flat = pred_flat[:bulk_n]
        gt_flat = gt_flat[:bulk_n]

    # Zero-copy (row-major bitcast) reshape to a lane-dense [m_rows, 128] slab.
    pred2d = pred_flat.reshape(m_rows, _LANE)
    gt2d = gt_flat.reshape(m_rows, _LANE)

    # ---- tiling -------------------------------------------------------------
    p = num_cores if (num_cores > 1 and m_rows >= num_cores * _SUBLANE) else 1
    rows_per_core = pl.cdiv(m_rows, p)

    itembytes = pred2d.dtype.itemsize + gt2d.dtype.itemsize
    bytes_per_row_buffered = 2 * _LANE * itembytes      # double-buffered inputs
    budget = int(vmem_phys * 0.85)
    reserve = 8 * (1 << 20)                             # chunk temps + headroom
    max_tm = max(_SUBLANE,
                 _round_down(max(budget - reserve, 0) // bytes_per_row_buffered,
                             _SUBLANE))

    tm = min(_round_up(tile_m, _SUBLANE),
             _round_up(rows_per_core, _SUBLANE),
             _round_down(m_rows, _SUBLANE),
             max_tm)
    if tm > _SUB_ROWS:
        tm = _round_down(tm, _SUB_ROWS)
    sub_rows = min(tm, _SUB_ROWS)
    assert tm % sub_rows == 0 and sub_rows % _SUBLANE == 0

    total_blocks = pl.cdiv(m_rows, tm)
    p = min(p, total_blocks)
    steps = pl.cdiv(total_blocks, p)
    needs_mask = (p * steps * tm) != m_rows

    vmem_limit = int(min(vmem_phys * 0.9,
                         max(32 * (1 << 20), 2 * tm * _LANE * itembytes + reserve)))

    if p * steps == total_blocks:
        row_map = lambda pi, i: (pi * steps + i, 0)
    else:
        # Some grid points exceed the valid block range (uneven core split);
        # clamp them to the last real block -- their contribution is discarded
        # by the in-kernel validity select.
        last_blk = total_blocks - 1
        row_map = lambda pi, i: (jnp.minimum(pi * steps + i, last_blk), 0)

    kernel = functools.partial(_bce_sum_kernel, valid_rows=m_rows,
                               needs_mask=needs_mask, sub_rows=sub_rows)

    cost = pl.CostEstimate(
        flops=6 * bulk_n,
        transcendentals=2 * bulk_n,
        bytes_accessed=int(bulk_n * itembytes + p * _SUBLANE * _LANE * 4),
    )

    def _launch(axis0_semantics):
        return pl.pallas_call(
            kernel,
            out_shape=jax.ShapeDtypeStruct((p, _SUBLANE, _LANE), jnp.float32),
            grid_spec=pltpu.PrefetchScalarGridSpec(
                num_scalar_prefetch=0,
                grid=(p, steps),
                in_specs=[pl.BlockSpec((tm, _LANE), row_map),
                          pl.BlockSpec((tm, _LANE), row_map)],
                out_specs=pl.BlockSpec((1, _SUBLANE, _LANE),
                                       lambda pi, i: (pi, 0, 0)),
            ),
            compiler_params=pltpu.CompilerParams(
                dimension_semantics=(axis0_semantics, "arbitrary"),
                vmem_limit_bytes=vmem_limit,
            ),
            cost_estimate=cost,
        )(pred2d, gt2d)

    if p > 1:
        core_par = getattr(pltpu, "CORE_PARALLEL", "parallel")
        try:
            partials = _launch(core_par)
        except Exception:
            partials = _launch("parallel")
    else:
        partials = _launch("arbitrary")

    return (jnp.sum(partials) + tail_sum) / jnp.float32(n)


class ImplicitLossPallas:
    """JAX/Pallas port of ImplicitLoss.  Only the bce_loss branch has compute."""

    def __init__(self, bce_loss=True):
        self.bce_loss = bce_loss

    def __call__(self, model_output, gt, epoch, mode="train"):
        loss_constraints = {}
        gt_occupancy = gt["occupancy"]
        # No wrapper-side upcast: the kernel casts to f32 in VMEM, matching
        # `.to(torch.float32)` / `.float()` semantics of the module while
        # keeping HBM traffic at the native dtype widths.
        pred_occupancy = model_output["model_out"]
        if self.bce_loss:
            loss_constraints["occ_bce_constraint"] = bce_with_logits_mean(
                pred_occupancy, gt_occupancy
            )
        return loss_constraints


def _reference_bce_mean(pred, gt):
    x = pred.astype(jnp.float32)
    y = gt.astype(jnp.float32)
    return jnp.mean(jnp.maximum(x, 0.0) - x * y + jnp.log1p(jnp.exp(-jnp.abs(x))))


if __name__ == "__main__":
    key = jax.random.PRNGKey(0)
    k1, k2, k3, k4, k5, k6 = jax.random.split(key, 6)

    # 1) Module-style small case: batch=2, num_points=1024 (128-aligned,
    #    zero-copy, unmasked fast path).
    batch, num_points = 2, 1024
    pred = jax.random.normal(k1, (batch, num_points), dtype=jnp.float32) * 3.0
    gt_occ = (jax.random.uniform(k2, (batch, num_points)) > 0.5).astype(jnp.bfloat16)

    loss_fn = ImplicitLossPallas(bce_loss=True)
    out = loss_fn({"model_out": pred}, {"occupancy": gt_occ}, epoch=0, mode="train")
    loss = jax.block_until_ready(out["occ_bce_constraint"])
    ref = jax.block_until_ready(_reference_bce_mean(pred, gt_occ))
    assert jnp.allclose(loss, ref, rtol=5e-5, atol=1e-6), (loss, ref)

    # 2) Ragged element count: sub-128 lane tail in JAX + masked boundary block.
    pred_odd = jax.random.normal(k3, (1931,), dtype=jnp.float32) * 3.0
    gt_odd = (jax.random.uniform(k4, (1931,)) > 0.5).astype(jnp.bfloat16)
    loss_odd = jax.block_until_ready(bce_with_logits_mean(pred_odd, gt_odd))
    ref_odd = jax.block_until_ready(_reference_bce_mean(pred_odd, gt_odd))
    assert jnp.allclose(loss_odd, ref_odd, rtol=5e-5, atol=1e-6), (loss_odd, ref_odd)

    # 3) 128-aligned but not block-aligned: exercises the chunked fori_loop body
    #    and the gated boundary mask with fully zero-copy inputs.
    pred_mid = jax.random.normal(k5, (2051, 128), dtype=jnp.float32) * 3.0
    gt_mid = (jax.random.uniform(k6, (2051, 128)) > 0.5).astype(jnp.bfloat16)
    loss_mid = jax.block_until_ready(bce_with_logits_mean(pred_mid, gt_mid))
    ref_mid = jax.block_until_ready(_reference_bce_mean(pred_mid, gt_mid))
    assert jnp.allclose(loss_mid, ref_mid, rtol=1e-4, atol=1e-6), (loss_mid, ref_mid)

    print("KERNEL_OK")
</pallas_src>

<mosaic_0001>
module attributes {stable_mosaic.version = 11 : i64} {
  func.func @_bce_sum_kernel(%arg0: i32, %arg1: i32, %arg2: memref<16x128xf32, #tpu.memory_space<vmem>>, %arg3: memref<16x128xbf16, #tpu.memory_space<vmem>>, %arg4: memref<1x8x128xf32, #tpu.memory_space<vmem>>) attributes {dimension_semantics = [#tpu.dimension_semantics<arbitrary>, #tpu.dimension_semantics<arbitrary>], iteration_bounds = array<i64: 1, 1>, scalar_prefetch = 0 : i64, scratch_operands = 0 : i64, tpu.core_type = #tpu.core_type<tc>, window_params = [{transform_indices = @transform_0, window_bounds = array<i64: 16, 128>}, {transform_indices = @transform_1, window_bounds = array<i64: 16, 128>}, {transform_indices = @transform_2, window_bounds = array<i64: 1, 8, 128>}]} {
    %c0_i32 = arith.constant 0 : i32
    %0 = arith.cmpi eq, %arg1, %c0_i32 : i32
    %1 = arith.extui %0 : i1 to i32
    %c0_i32_0 = arith.constant 0 : i32
    %2 = arith.cmpi ne, %1, %c0_i32_0 : i32
    scf.if %2 {
      %cst_12 = arith.constant 0.000000e+00 : f32
      %24 = vector.broadcast %cst_12 : f32 to vector<1x8x128xf32>
      %c0_13 = arith.constant 0 : index
      %c0_14 = arith.constant 0 : index
      %c0_15 = arith.constant 0 : index
      %25 = vector.load %arg4[%c0_13, %c0_14, %c0_15] : memref<1x8x128xf32, #tpu.memory_space<vmem>>, vector<1x8x128xf32>
      tpu.vector_store %arg4[%c0_13, %c0_14, %c0_15], %24 {strides = array<i32>} : memref<1x8x128xf32, #tpu.memory_space<vmem>>, vector<1x8x128xf32>,
    } else {
    }
    %c0 = arith.constant 0 : index
    %c0_1 = arith.constant 0 : index
    %3 = vector.load %arg2[%c0, %c0_1] : memref<16x128xf32, #tpu.memory_space<vmem>>, vector<16x128xf32>
    %c0_2 = arith.constant 0 : index
    %c0_3 = arith.constant 0 : index
    %4 = vector.load %arg3[%c0_2, %c0_3] : memref<16x128xbf16, #tpu.memory_space<vmem>>, vector<16x128xbf16>
    %5 = arith.extf %4 : vector<16x128xbf16> to vector<16x128xf32>
    %cst = arith.constant 0.000000e+00 : f32
    %6 = vector.broadcast %cst : f32 to vector<16x128xf32>
    %7 = arith.maximumf %3, %6 : vector<16x128xf32>
    %8 = arith.mulf %3, %5 : vector<16x128xf32>
    %9 = arith.subf %7, %8 : vector<16x128xf32>
    %10 = math.absf %3 : vector<16x128xf32>
    %cst_4 = arith.constant 0.000000e+00 : f32
    %11 = vector.broadcast %cst_4 : f32 to vector<16x128xf32>
    %12 = arith.subf %11, %10 : vector<16x128xf32>
    %13 = math.exp %12 : vector<16x128xf32>
    %14 = math.log1p %13 : vector<16x128xf32>
    %15 = arith.addf %9, %14 : vector<16x128xf32>
    %c0_5 = arith.constant 0 : index
    %c0_6 = arith.constant 0 : index
    %c0_7 = arith.constant 0 : index
    %16 = vector.load %arg4[%c0_5, %c0_6, %c0_7] : memref<1x8x128xf32, #tpu.memory_space<vmem>>, vector<1x8x128xf32>
    %17 = vector.shape_cast %16 : vector<1x8x128xf32> to vector<8x128xf32>
    %18 = vector.shape_cast %15 : vector<16x128xf32> to vector<2x8x128xf32>
    %cst_8 = arith.constant dense<0.000000e+00> : vector<8x128xf32>
    %19 = vector.multi_reduction <add>, %18, %cst_8 [0] : vector<2x8x128xf32> to vector<8x128xf32>
    %20 = arith.addf %17, %19 : vector<8x128xf32>
    %c0_9 = arith.constant 0 : index
    %c0_10 = arith.constant 0 : index
    %c0_11 = arith.constant 0 : index
    %21 = vector.load %arg4[%c0_9, %c0_10, %c0_11] : memref<1x8x128xf32, #tpu.memory_space<vmem>>, vector<1x8x128xf32>
    %22 = vector.shape_cast %21 : vector<1x8x128xf32> to vector<8x128xf32>
    %23 = vector.shape_cast %20 : vector<8x128xf32> to vector<1x8x128xf32>
    tpu.vector_store %arg4[%c0_9, %c0_10, %c0_11], %23 {strides = array<i32>} : memref<1x8x128xf32, #tpu.memory_space<vmem>>, vector<1x8x128xf32>,
    return
  }
  func.func @transform_0(%arg0: i32, %arg1: i32) -> (i32, i32) {
    %c1_i32 = arith.constant 1 : i32
    %0 = arith.muli %arg0, %c1_i32 : i32
    %1 = arith.addi %0, %arg1 : i32
    %c0_i32 = arith.constant 0 : i32
    %c0_i32_0 = arith.constant 0 : i32
    return %1, %c0_i32 : i32, i32
  }
  func.func @transform_1(%arg0: i32, %arg1: i32) -> (i32, i32) {
    %c1_i32 = arith.constant 1 : i32
    %0 = arith.muli %arg0, %c1_i32 : i32
    %1 = arith.addi %0, %arg1 : i32
    %c0_i32 = arith.constant 0 : i32
    %c0_i32_0 = arith.constant 0 : i32
    return %1, %c0_i32 : i32, i32
  }
  func.func @transform_2(%arg0: i32, %arg1: i32) -> (i32, i32, i32) {
    %c0_i32 = arith.constant 0 : i32
    %c0_i32_0 = arith.constant 0 : i32
    %c0_i32_1 = arith.constant 0 : i32
    return %arg0, %c0_i32, %c0_i32_0 : i32, i32, i32
  }
}

</mosaic_0001>

<bundles_post_ra>
// kernel: tpu_custom_call.1
= control target key start
LH: loop header
LB: loop body
LE: loop exit
PB: predicated region body
PF: predicated region fallthrough
CT: control target
= control target key end

     0   :  { %7 = vsyncpa [#allocation3], 0  ;;  %s252_s0 = inlined_call_operand.hbm [shape: f32[16,128], index: 0, kind: input, shape index: {}]   ;;  %s253_s1 = inlined_call_operand.hbm [shape: bf16[16,128], index: 1, kind: input, shape index: {}]   ;;  %s254_s2 = inlined_call_operand.hbm [shape: f32[1,8,128], index: 2, kind: output, shape index: {}]  }
   0x1   :  { %8 = vsyncpa [#allocation6], 0 }
   0x2   :  { %9 = vsyncpa [#allocation4], 0  ;;  %s18_s11 = sshll.u32 %s252_s0, 4  ;;  %s221_s12 = smov [#allocation2]   ;;  %s19_s11 = int_to_ptr.hbm [resolvable:$true] %s18_s11 }
   0x3   :  { %s20_s13 = sshll.u32 %s221_s12, 4  ;;  %s35_s16 = sshll.u32 %s253_s1, 4  ;;  %s21_s13 = int_to_ptr.vmem [resolvable:$true] %s20_s13  ;;  %s36_s16 = int_to_ptr.hbm [resolvable:$true] %s35_s16 }
   0x4   :  { %s222_s17 = smov 128   ;;  %s223_s18 = smov 8  }
   0x5   :  { %26 = dma.hbm_to_vmem [thread:$0]  %s19_s11, 256, %s21_s13, [#allocation3], %s222_s17, %s222_s17, %s223_s18  }
   0x6   :  { %s224_s19 = smov [#allocation5]   ;;  %s225_s21 = smov 64  }
   0x7   :  { %s37_s20 = sshll.u32 %s224_s19, 4  ;;  %s226_s22 = smov 4   ;;  %s38_s20 = int_to_ptr.vmem [resolvable:$true] %s37_s20 }
   0x8   :  { %43 = dma.hbm_to_vmem [thread:$0]  %s36_s16, 128, %s38_s20, [#allocation6], %s225_s21, %s225_s21, %s226_s22  }
   0x9   :  { %215 = dma.done.wait [#allocation3], 256  }
   0xa   :  { %216 = vsyncadd [#allocation3], 4294967040 }
   0xb   :  { %217 = dma.done.wait [#allocation6], 128  }
   0xc   :  { %218 = vsyncadd [#allocation6], 4294967168  ;;  %v61_v0 = vld [vmem:[#allocation2] sm:$0xff]  ;;  %v62_v1 = vld [vmem:[#allocation2 + $0x8] sm:$0xff]  ;;  %s227_s0 = smov [#allocation7]   ;;  %s112_s25 = sshll.u32 %s254_s2, 4  ;;  %s113_s25 = int_to_ptr.hbm [resolvable:$true] %s112_s25 }
   0xd   :  { %v73_v2 = vand.u32 2147483647, %v61_v0  ;;  %v74_v3 = vand.u32 2147483647, %v62_v1  ;;  %v124_v8 = vld [vmem:[#allocation5] sm:$0xff]   ;;  %v67_v18 = vmax.f32 %v61_v0, 0.0 }
   0xe   :  { %v125_v11 = vunpack.c.l.bf16 %v124_v8  ;;  %v126_v14 = vunpack.c.h.bf16 %v124_v8  ;;  %v68_v22 = vmax.f32 %v62_v1, 0.0  ;;  %s110_s1 = sshll.u32 %s227_s0, 4  ;;  %s111_s1 = int_to_ptr.vmem [resolvable:$true] %s110_s1 }
   0xf   :  { %v75_v4 = vsub.f32 0.0, %v73_v2  ;;  %v76_v5 = vsub.f32 0.0, %v74_v3 }
  0x10   :  { %v69_v19 = vmul.f32 %v125_v11, %v61_v0  ;;  %v70_v23 = vmul.f32 %v126_v14, %v62_v1 }
  0x11   :  { %v77_v6 = vmul.f32 1.442695, %v75_v4  ;;  %v79_v7 = vmul.f32 1.442695, %v76_v5 }
  0x12   :  { %v71_v27 = vsub.f32 %v67_v18, %v69_v19  ;;  %v72_v30 = vsub.f32 %v68_v22, %v70_v23 }
  0x13   :  { %135 = vpow2.f32 %v77_v6 }
  0x14   :  { %137 = vpow2.f32 %v79_v7 }
  0x19   :  { %v136_v9 = vpop.eup %135 }
  0x1a   :  { %v138_v10 = vpop.eup %137  ;;  %v81_v12 = vadd.f32 1.0, %v136_v9  ;;  %v84_v13 = vmul.f32 -0.5, %v136_v9  ;;  %v87_v20 = vand.u32 2147483647, %v136_v9 }
  0x1b   :  { %v90_v15 = vadd.f32 1.0, %v138_v10  ;;  %v93_v16 = vmul.f32 -0.5, %v138_v10  ;;  %v96_v24 = vand.u32 2147483647, %v138_v10 }
  0x1c   :  { %139 = vlog2.f32 %v81_v12  ;;  %v85_v17 = vadd.f32 1.0, %v84_v13  ;;  %vm88_vm0 = vcmp.lt.f32.partialorder %v87_v20, 0.0004427343 }
  0x1d   :  { %141 = vlog2.f32 %v90_v15  ;;  %v94_v21 = vadd.f32 1.0, %v93_v16  ;;  %vm97_vm1 = vcmp.lt.f32.partialorder %v96_v24, 0.0004427343 }
  0x1e   :  { %v86_v25 = vmul.f32 %v136_v9, %v85_v17 }
  0x1f   :  { %v95_v28 = vmul.f32 %v138_v10, %v94_v21 }
  0x22   :  { %v140_v26 = vpop.eup %139 }
  0x23   :  { %v142_v29 = vpop.eup %141  ;;  %v83_v31 = vmul.f32 0.6931472, %v140_v26 }
  0x24   :  { %v92_v32 = vmul.f32 0.6931472, %v142_v29 }
  0x25   :  { %v89_v33 = vsel %vm88_vm0, %v86_v25, %v83_v31 }
  0x26   :  { %v98_v34 = vsel %vm97_vm1, %v95_v28, %v92_v32  ;;  %v99_v35 = vadd.f32 %v89_v33, %v71_v27 }
  0x27   :  { %v100_v36 = vadd.f32 %v98_v34, %v72_v30 }
  0x29   :  { %v102_v37 = vadd.f32 %v100_v36, %v99_v35 }
  0x2b   :  { %104 = vst [vmem:[#allocation7] sm:$0xff] %v102_v37 }
  0x2c   :  { %115 = dma.vmem_to_hbm [thread:$0]  %s111_s1, 128, %s113_s25, [#allocation4]  }
  0x2d   :  { %219 = dma.done.wait [#allocation4], 128  }
  0x2e   :  { %220 = vsyncadd [#allocation4], 4294967168 }
  0x2f   :  { %120 = vsyncpa [#allocation3], 1 }
  0x30   :  { %121 = vsyncpa [#allocation6], 1 }
  0x31   :  { %122 = vsyncpa [#allocation4], 1 }

</bundles_post_ra>
